<compile_context>
chip_gen: v7x
topology: tpu7x:2x2x1
jax: 0.10.0
libtpu: 0.0.40
codegen_flags: <defaults>
</compile_context>

<pallas_src>
import functools

import jax
import jax.numpy as jnp
from jax.experimental import pallas as pl
from jax.experimental.pallas import tpu as pltpu


def _round_up(x, m):
    return ((x + m - 1) // m) * m


def _resident_spec(block_shape, index_map):
    """BlockSpec for an operand whose block index never changes across the grid.

    Requests single-buffering (pl.Buffered(1)) when the running JAX supports it so the
    resident weight / adjacency / bias tensors are not double-buffered in VMEM.
    """
    try:
        return pl.BlockSpec(block_shape, index_map, pipeline_mode=pl.Buffered(1))
    except (AttributeError, TypeError):
        return pl.BlockSpec(block_shape, index_map)


def _graphical_conv_kernel(x_ref, w_ref, adjf_ref, bout_ref, o_ref, z_ref,
                           *, k_size, c_out_p, b_tile, v_pad, z_dtype):
    # x_ref:    [B_tile, C_in, Vp]       one batch tile per grid step
    # w_ref:    [K*C_out_p, C_in]        conv weight, row o = k*C_out_p + c (resident)
    # adjf_ref: [K*Vp, Vp]               adjacency stacked over k along rows (resident)
    # bout_ref: [C_out_p, Vp]            precomputed, sample-independent bias term (f32)
    # o_ref:    [B_tile, C_out_p, Vp]
    # z_ref:    VMEM scratch [B_tile*C_out_p, K*Vp] holding the conv results rearranged
    #           so the adjacency contraction is ONE K*Vp-deep MXU matmul with the batch
    #           folded into the M rows.
    w = w_ref[...]                                           # hoisted, resident in VMEM

    # Stage 1: 1x1 conv -- one [K*C_out_p, C_in] @ [C_in, Vp] MXU matmul per sample.
    # The per-k sublane slices of the result go to lane offset k*Vp / sublane offset
    # b*C_out_p of the scratch; all offsets are (sublane-pack, 128)-aligned -> plain
    # vector stores, no relayout between the two matmul stages.
    for b in range(b_tile):
        z_b = jnp.dot(w, x_ref[b], preferred_element_type=z_dtype)   # [K*C_out_p, Vp]
        for k in range(k_size):
            z_ref[b * c_out_p:(b + 1) * c_out_p, k * v_pad:(k + 1) * v_pad] = (
                z_b[k * c_out_p:(k + 1) * c_out_p, :])

    # Stage 2: fused adjacency contraction.  Batch folded into M, k folded into the
    # contraction depth: [B_tile*C_out_p, K*Vp] @ [K*Vp, Vp], f32 accumulation.
    out = jnp.dot(z_ref[...], adjf_ref[...], preferred_element_type=jnp.float32)

    # Hoisted bias contribution + lane-dense stores.
    bout = bout_ref[...]
    for b in range(b_tile):
        o_ref[b] = (out[b * c_out_p:(b + 1) * c_out_p, :] + bout).astype(o_ref.dtype)


def graphical_conv(x, adj, weight, bias=None, *, b_tile=8, compute_dtype=None,
                   vmem_limit_bytes=None, interpret=False):
    """Pallas TPU GraphicalConv forward (shared-adjacency branch).

    x:      [N, C_in, V]
    adj:    [K, V, V]                 shared adjacency stack
    weight: [K*C_out, C_in]           Conv1d(1x1) weight, row order o = k*C_out + c
    bias:   [K*C_out] or None
    b_tile: samples per grid step (8-32 recommended for ST-GCN-sized N = batch*frames)
    compute_dtype: e.g. jnp.bfloat16 for native-rate MXU inputs on v5e/v6e/v7x
                   (applies to BOTH matmul stages; accumulation stays f32)
    vmem_limit_bytes: override the scoped-VMEM budget; default is derived from the block
                   sizes and capped at 48 MiB (v7x-safe). On v5e/v6e (128 MiB VMEM) pass
                   a larger value together with a larger b_tile.
    Returns (y [N, C_out, V] float32, adj) -- same contract as the PyTorch module.
    """
    # TODO(synk): the per-sample adjacency adj[N, K, V, V] branch of the PyTorch forward
    # is not implemented (only the shared [K, V, V] branch).
    assert adj.ndim == 3, "only the shared [K, V, V] adjacency branch is implemented"

    n, c_in, v = x.shape
    k_size = adj.shape[0]
    kc = weight.shape[0]
    assert kc % k_size == 0
    c_out = kc // k_size
    if bias is None:
        bias = jnp.zeros((kc,), jnp.float32)

    z_dtype = jnp.float32 if compute_dtype is None else jnp.dtype(compute_dtype)
    in_dtype = z_dtype
    z_itemsize = jnp.dtype(z_dtype).itemsize

    # ---- Layout / padding --------------------------------------------------------
    # Lane-dense vertex axis (unmasked vst) and sublane-pack-aligned C_out (8 for f32,
    # 16 for bf16) so every slice between the two matmul stages is tile-aligned.
    v_pad = max(128, _round_up(v, 128))
    sublane_pack = max(8, 32 // z_itemsize)
    c_out_p = _round_up(c_out, sublane_pack)
    kc_p = k_size * c_out_p

    b_tile = max(1, min(int(b_tile), n))
    n_pad = _round_up(n, b_tile)

    x_p = jnp.pad(x, ((0, n_pad - n), (0, 0), (0, v_pad - v))).astype(in_dtype)

    # Conv weight: [K, C_out, C_in] -> pad C_out -> [K*C_out_p, C_in].
    w_p = jnp.pad(weight.reshape(k_size, c_out, c_in),
                  ((0, 0), (0, c_out_p - c_out), (0, 0)))
    w_p = w_p.reshape(kc_p, c_in).astype(in_dtype)

    # Adjacency: zero-pad V (padded rows/cols cancel exactly) and stack k along the
    # contraction rows -> [K*Vp, Vp].  Cast to compute_dtype so the dominant matmul
    # runs at native MXU rate when bf16 is requested.
    adj_f32 = adj.astype(jnp.float32)
    adj_p = jnp.pad(adj_f32, ((0, 0), (0, v_pad - v), (0, v_pad - v)))
    adj_flat = adj_p.reshape(k_size * v_pad, v_pad).astype(in_dtype)

    # Bias hoist: its contribution is sample-independent,
    #   bias_out[c, w] = sum_k bias[k*C_out + c] * sum_v adj[k, v, w]
    bias_out = jnp.einsum("kc,kw->cw",
                          bias.reshape(k_size, c_out).astype(jnp.float32),
                          adj_f32.sum(axis=1))
    bias_out_p = jnp.pad(bias_out, ((0, c_out_p - c_out), (0, v_pad - v)))

    grid = (n_pad // b_tile,)

    # ---- VMEM budget (derived from block sizes, v7x-safe default cap) -------------
    x_block_bytes = b_tile * c_in * v_pad * z_itemsize
    out_block_bytes = b_tile * c_out_p * v_pad * 4
    resident_bytes = (kc_p * c_in * z_itemsize
                      + k_size * v_pad * v_pad * z_itemsize
                      + c_out_p * v_pad * 4)
    z_scratch_bytes = b_tile * c_out_p * k_size * v_pad * z_itemsize
    need = (2 * x_block_bytes + 2 * out_block_bytes + 2 * resident_bytes
            + z_scratch_bytes + (2 << 20))
    if vmem_limit_bytes is None:
        vmem_limit_bytes = int(min(max(32 << 20, 2 * need), 48 << 20))
    # TODO(synk): for very large V (Vp >= 1024), add a second grid axis over output
    # columns with adj blocked as (K*Vp, tn) so the full adjacency need not be resident.

    flops = (2 * n_pad * kc_p * c_in * v_pad
             + 2 * n_pad * c_out_p * (k_size * v_pad) * v_pad)
    bytes_accessed = (x_p.size * x_p.dtype.itemsize
                      + w_p.size * w_p.dtype.itemsize
                      + adj_flat.size * adj_flat.dtype.itemsize
                      + bias_out_p.size * 4
                      + n_pad * c_out_p * v_pad * 4)

    kernel = functools.partial(_graphical_conv_kernel, k_size=k_size, c_out_p=c_out_p,
                               b_tile=b_tile, v_pad=v_pad, z_dtype=z_dtype)

    y_p = pl.pallas_call(
        kernel,
        out_shape=jax.ShapeDtypeStruct((n_pad, c_out_p, v_pad), jnp.float32),
        grid=grid,
        in_specs=[
            pl.BlockSpec((b_tile, c_in, v_pad), lambda i: (i, 0, 0)),     # x tile
            _resident_spec((kc_p, c_in), lambda i: (0, 0)),               # weight
            _resident_spec((k_size * v_pad, v_pad), lambda i: (0, 0)),    # adj (fused)
            _resident_spec((c_out_p, v_pad), lambda i: (0, 0)),           # bias_out
        ],
        out_specs=pl.BlockSpec((b_tile, c_out_p, v_pad), lambda i: (i, 0, 0)),
        scratch_shapes=[pltpu.VMEM((b_tile * c_out_p, k_size * v_pad), z_dtype)],
        compiler_params=pltpu.CompilerParams(
            # Batch tiles are fully independent -> parallel axis (shards across v7x's
            # two TensorCores; measured neutral on single-TC v5e/v6e).
            dimension_semantics=("parallel",),
            vmem_limit_bytes=vmem_limit_bytes,
        ),
        cost_estimate=pl.CostEstimate(
            flops=flops, transcendentals=0, bytes_accessed=bytes_accessed),
        interpret=interpret,
    )(x_p, w_p, adj_flat, bias_out_p)

    return y_p[:n, :c_out, :v], adj


def _ref_graphical_conv(x, adj, weight, bias):
    """Pure-JAX reference of the PyTorch GraphicalConv forward."""
    n, c_in, v = x.shape
    k = adj.shape[0]
    c_out = weight.shape[0] // k
    y = jnp.einsum("oi,niv->nov", weight, x) + bias[None, :, None]
    y = y.reshape(n, k, c_out, v)
    return jnp.einsum("nkcv,kvw->ncw", y, adj)


if __name__ == "__main__":
    # Small shapes exercising every padding path: N not a multiple of b_tile,
    # C_out not a multiple of the sublane pack, V < 128.
    N, C_IN, C_OUT, K, V = 6, 4, 6, 3, 16

    key = jax.random.PRNGKey(0)
    kx, ka, kw, kb = jax.random.split(key, 4)
    x = jax.random.normal(kx, (N, C_IN, V), jnp.float32)
    adj = jax.random.uniform(ka, (K, V, V), jnp.float32)
    weight = 0.2 * jax.random.normal(kw, (K * C_OUT, C_IN), jnp.float32)
    bias = 0.2 * jax.random.normal(kb, (K * C_OUT,), jnp.float32)

    y_ref = _ref_graphical_conv(x, adj, weight, bias)

    # Exact f32 path.
    y, adj_out = graphical_conv(x, adj, weight, bias, b_tile=4)
    y = jax.block_until_ready(y)
    assert y.shape == (N, C_OUT, V)
    assert adj_out.shape == adj.shape
    max_err = float(jnp.max(jnp.abs(y - y_ref)))
    assert jnp.allclose(y, y_ref, atol=1e-4, rtol=1e-4), max_err

    # bf16-input MXU path (f32 accumulation) -> looser tolerance vs. the f32 reference.
    y_bf16, _ = graphical_conv(x, adj, weight, bias, b_tile=4,
                               compute_dtype=jnp.bfloat16)
    y_bf16 = jax.block_until_ready(y_bf16)
    max_err_bf16 = float(jnp.max(jnp.abs(y_bf16 - y_ref)))
    assert jnp.allclose(y_bf16, y_ref, atol=1e-1, rtol=1e-1), max_err_bf16

    print("KERNEL_OK")
</pallas_src>

<mosaic_0001>
module attributes {stable_mosaic.version = 11 : i64} {
  func.func @_graphical_conv_kernel(%arg0: i32, %arg1: memref<4x4x128xf32, #tpu.memory_space<vmem>>, %arg2: memref<24x4xf32, #tpu.memory_space<vmem>>, %arg3: memref<384x128xf32, #tpu.memory_space<vmem>>, %arg4: memref<8x128xf32, #tpu.memory_space<vmem>>, %arg5: memref<4x8x128xf32, #tpu.memory_space<vmem>>, %arg6: memref<32x384xf32, #tpu.memory_space<vmem>>) attributes {dimension_semantics = [#tpu.dimension_semantics<parallel>], iteration_bounds = array<i64: 2>, scalar_prefetch = 0 : i64, scratch_operands = 1 : i64, tpu.core_type = #tpu.core_type<tc>, window_params = [{transform_indices = @transform_0, window_bounds = array<i64: 4, 4, 128>}, {pipeline_mode = #tpu.pipeline_mode<synchronous>, transform_indices = @transform_1, window_bounds = array<i64: 24, 4>}, {pipeline_mode = #tpu.pipeline_mode<synchronous>, transform_indices = @transform_2, window_bounds = array<i64: 384, 128>}, {pipeline_mode = #tpu.pipeline_mode<synchronous>, transform_indices = @transform_3, window_bounds = array<i64: 8, 128>}, {transform_indices = @transform_4, window_bounds = array<i64: 4, 8, 128>}]} {
    %c0 = arith.constant 0 : index
    %c0_0 = arith.constant 0 : index
    %0 = vector.load %arg2[%c0, %c0_0] : memref<24x4xf32, #tpu.memory_space<vmem>>, vector<24x4xf32>
    %c0_1 = arith.constant 0 : index
    %c0_2 = arith.constant 0 : index
    %c0_3 = arith.constant 0 : index
    %1 = vector.load %arg1[%c0_1, %c0_2, %c0_3] : memref<4x4x128xf32, #tpu.memory_space<vmem>>, vector<1x4x128xf32>
    %2 = vector.shape_cast %1 : vector<1x4x128xf32> to vector<4x128xf32>
    %cst = arith.constant dense<0.000000e+00> : vector<24x128xf32>
    %3 = tpu.matmul %0, %2, %cst {dimension_numbers = #tpu.dot_dimension_numbers<[1], [0], [0], [1], [0, 0, 1, 1], [], []>} : vector<24x4xf32>, vector<4x128xf32>, vector<24x128xf32> -> vector<24x128xf32>
    %4 = vector.extract_strided_slice %3 {offsets = [0, 0], sizes = [8, 128], strides = [1, 1]} : vector<24x128xf32> to vector<8x128xf32>
    %c0_4 = arith.constant 0 : index
    %c0_5 = arith.constant 0 : index
    %5 = vector.load %arg6[%c0_4, %c0_5] : memref<32x384xf32, #tpu.memory_space<vmem>>, vector<8x128xf32>
    tpu.vector_store %arg6[%c0_4, %c0_5], %4 {strides = array<i32>} : memref<32x384xf32, #tpu.memory_space<vmem>>, vector<8x128xf32>,
    %6 = vector.extract_strided_slice %3 {offsets = [8, 0], sizes = [8, 128], strides = [1, 1]} : vector<24x128xf32> to vector<8x128xf32>
    %c0_6 = arith.constant 0 : index
    %c128 = arith.constant 128 : index
    %7 = vector.load %arg6[%c0_6, %c128] : memref<32x384xf32, #tpu.memory_space<vmem>>, vector<8x128xf32>
    tpu.vector_store %arg6[%c0_6, %c128], %6 {strides = array<i32>} : memref<32x384xf32, #tpu.memory_space<vmem>>, vector<8x128xf32>,
    %8 = vector.extract_strided_slice %3 {offsets = [16, 0], sizes = [8, 128], strides = [1, 1]} : vector<24x128xf32> to vector<8x128xf32>
    %c0_7 = arith.constant 0 : index
    %c256 = arith.constant 256 : index
    %9 = vector.load %arg6[%c0_7, %c256] : memref<32x384xf32, #tpu.memory_space<vmem>>, vector<8x128xf32>
    tpu.vector_store %arg6[%c0_7, %c256], %8 {strides = array<i32>} : memref<32x384xf32, #tpu.memory_space<vmem>>, vector<8x128xf32>,
    %c1 = arith.constant 1 : index
    %c0_8 = arith.constant 0 : index
    %c0_9 = arith.constant 0 : index
    %10 = vector.load %arg1[%c1, %c0_8, %c0_9] : memref<4x4x128xf32, #tpu.memory_space<vmem>>, vector<1x4x128xf32>
    %11 = vector.shape_cast %10 : vector<1x4x128xf32> to vector<4x128xf32>
    %cst_10 = arith.constant dense<0.000000e+00> : vector<24x128xf32>
    %12 = tpu.matmul %0, %11, %cst_10 {dimension_numbers = #tpu.dot_dimension_numbers<[1], [0], [0], [1], [0, 0, 1, 1], [], []>} : vector<24x4xf32>, vector<4x128xf32>, vector<24x128xf32> -> vector<24x128xf32>
    %13 = vector.extract_strided_slice %12 {offsets = [0, 0], sizes = [8, 128], strides = [1, 1]} : vector<24x128xf32> to vector<8x128xf32>
    %c8 = arith.constant 8 : index
    %c0_11 = arith.constant 0 : index
    %14 = vector.load %arg6[%c8, %c0_11] : memref<32x384xf32, #tpu.memory_space<vmem>>, vector<8x128xf32>
    tpu.vector_store %arg6[%c8, %c0_11], %13 {strides = array<i32>} : memref<32x384xf32, #tpu.memory_space<vmem>>, vector<8x128xf32>,
    %15 = vector.extract_strided_slice %12 {offsets = [8, 0], sizes = [8, 128], strides = [1, 1]} : vector<24x128xf32> to vector<8x128xf32>
    %c8_12 = arith.constant 8 : index
    %c128_13 = arith.constant 128 : index
    %16 = vector.load %arg6[%c8_12, %c128_13] : memref<32x384xf32, #tpu.memory_space<vmem>>, vector<8x128xf32>
    tpu.vector_store %arg6[%c8_12, %c128_13], %15 {strides = array<i32>} : memref<32x384xf32, #tpu.memory_space<vmem>>, vector<8x128xf32>,
    %17 = vector.extract_strided_slice %12 {offsets = [16, 0], sizes = [8, 128], strides = [1, 1]} : vector<24x128xf32> to vector<8x128xf32>
    %c8_14 = arith.constant 8 : index
    %c256_15 = arith.constant 256 : index
    %18 = vector.load %arg6[%c8_14, %c256_15] : memref<32x384xf32, #tpu.memory_space<vmem>>, vector<8x128xf32>
    tpu.vector_store %arg6[%c8_14, %c256_15], %17 {strides = array<i32>} : memref<32x384xf32, #tpu.memory_space<vmem>>, vector<8x128xf32>,
    %c2 = arith.constant 2 : index
    %c0_16 = arith.constant 0 : index
    %c0_17 = arith.constant 0 : index
    %19 = vector.load %arg1[%c2, %c0_16, %c0_17] : memref<4x4x128xf32, #tpu.memory_space<vmem>>, vector<1x4x128xf32>
    %20 = vector.shape_cast %19 : vector<1x4x128xf32> to vector<4x128xf32>
    %cst_18 = arith.constant dense<0.000000e+00> : vector<24x128xf32>
    %21 = tpu.matmul %0, %20, %cst_18 {dimension_numbers = #tpu.dot_dimension_numbers<[1], [0], [0], [1], [0, 0, 1, 1], [], []>} : vector<24x4xf32>, vector<4x128xf32>, vector<24x128xf32> -> vector<24x128xf32>
    %22 = vector.extract_strided_slice %21 {offsets = [0, 0], sizes = [8, 128], strides = [1, 1]} : vector<24x128xf32> to vector<8x128xf32>
    %c16 = arith.constant 16 : index
    %c0_19 = arith.constant 0 : index
    %23 = vector.load %arg6[%c16, %c0_19] : memref<32x384xf32, #tpu.memory_space<vmem>>, vector<8x128xf32>
    tpu.vector_store %arg6[%c16, %c0_19], %22 {strides = array<i32>} : memref<32x384xf32, #tpu.memory_space<vmem>>, vector<8x128xf32>,
    %24 = vector.extract_strided_slice %21 {offsets = [8, 0], sizes = [8, 128], strides = [1, 1]} : vector<24x128xf32> to vector<8x128xf32>
    %c16_20 = arith.constant 16 : index
    %c128_21 = arith.constant 128 : index
    %25 = vector.load %arg6[%c16_20, %c128_21] : memref<32x384xf32, #tpu.memory_space<vmem>>, vector<8x128xf32>
    tpu.vector_store %arg6[%c16_20, %c128_21], %24 {strides = array<i32>} : memref<32x384xf32, #tpu.memory_space<vmem>>, vector<8x128xf32>,
    %26 = vector.extract_strided_slice %21 {offsets = [16, 0], sizes = [8, 128], strides = [1, 1]} : vector<24x128xf32> to vector<8x128xf32>
    %c16_22 = arith.constant 16 : index
    %c256_23 = arith.constant 256 : index
    %27 = vector.load %arg6[%c16_22, %c256_23] : memref<32x384xf32, #tpu.memory_space<vmem>>, vector<8x128xf32>
    tpu.vector_store %arg6[%c16_22, %c256_23], %26 {strides = array<i32>} : memref<32x384xf32, #tpu.memory_space<vmem>>, vector<8x128xf32>,
    %c3 = arith.constant 3 : index
    %c0_24 = arith.constant 0 : index
    %c0_25 = arith.constant 0 : index
    %28 = vector.load %arg1[%c3, %c0_24, %c0_25] : memref<4x4x128xf32, #tpu.memory_space<vmem>>, vector<1x4x128xf32>
    %29 = vector.shape_cast %28 : vector<1x4x128xf32> to vector<4x128xf32>
    %cst_26 = arith.constant dense<0.000000e+00> : vector<24x128xf32>
    %30 = tpu.matmul %0, %29, %cst_26 {dimension_numbers = #tpu.dot_dimension_numbers<[1], [0], [0], [1], [0, 0, 1, 1], [], []>} : vector<24x4xf32>, vector<4x128xf32>, vector<24x128xf32> -> vector<24x128xf32>
    %31 = vector.extract_strided_slice %30 {offsets = [0, 0], sizes = [8, 128], strides = [1, 1]} : vector<24x128xf32> to vector<8x128xf32>
    %c24 = arith.constant 24 : index
    %c0_27 = arith.constant 0 : index
    %32 = vector.load %arg6[%c24, %c0_27] : memref<32x384xf32, #tpu.memory_space<vmem>>, vector<8x128xf32>
    tpu.vector_store %arg6[%c24, %c0_27], %31 {strides = array<i32>} : memref<32x384xf32, #tpu.memory_space<vmem>>, vector<8x128xf32>,
    %33 = vector.extract_strided_slice %30 {offsets = [8, 0], sizes = [8, 128], strides = [1, 1]} : vector<24x128xf32> to vector<8x128xf32>
    %c24_28 = arith.constant 24 : index
    %c128_29 = arith.constant 128 : index
    %34 = vector.load %arg6[%c24_28, %c128_29] : memref<32x384xf32, #tpu.memory_space<vmem>>, vector<8x128xf32>
    tpu.vector_store %arg6[%c24_28, %c128_29], %33 {strides = array<i32>} : memref<32x384xf32, #tpu.memory_space<vmem>>, vector<8x128xf32>,
    %35 = vector.extract_strided_slice %30 {offsets = [16, 0], sizes = [8, 128], strides = [1, 1]} : vector<24x128xf32> to vector<8x128xf32>
    %c24_30 = arith.constant 24 : index
    %c256_31 = arith.constant 256 : index
    %36 = vector.load %arg6[%c24_30, %c256_31] : memref<32x384xf32, #tpu.memory_space<vmem>>, vector<8x128xf32>
    tpu.vector_store %arg6[%c24_30, %c256_31], %35 {strides = array<i32>} : memref<32x384xf32, #tpu.memory_space<vmem>>, vector<8x128xf32>,
    %c0_32 = arith.constant 0 : index
    %c0_33 = arith.constant 0 : index
    %37 = vector.load %arg6[%c0_32, %c0_33] : memref<32x384xf32, #tpu.memory_space<vmem>>, vector<32x384xf32>
    %c0_34 = arith.constant 0 : index
    %c0_35 = arith.constant 0 : index
    %38 = vector.load %arg3[%c0_34, %c0_35] : memref<384x128xf32, #tpu.memory_space<vmem>>, vector<384x128xf32>
    %cst_36 = arith.constant dense<0.000000e+00> : vector<32x128xf32>
    %39 = tpu.matmul %37, %38, %cst_36 {dimension_numbers = #tpu.dot_dimension_numbers<[1], [0], [0], [1], [0, 0, 1, 1], [], []>} : vector<32x384xf32>, vector<384x128xf32>, vector<32x128xf32> -> vector<32x128xf32>
    %c0_37 = arith.constant 0 : index
    %c0_38 = arith.constant 0 : index
    %40 = vector.load %arg4[%c0_37, %c0_38] : memref<8x128xf32, #tpu.memory_space<vmem>>, vector<8x128xf32>
    %41 = vector.extract_strided_slice %39 {offsets = [0, 0], sizes = [8, 128], strides = [1, 1]} : vector<32x128xf32> to vector<8x128xf32>
    %42 = arith.addf %41, %40 : vector<8x128xf32>
    %c0_39 = arith.constant 0 : index
    %c0_40 = arith.constant 0 : index
    %c0_41 = arith.constant 0 : index
    %43 = vector.load %arg5[%c0_39, %c0_40, %c0_41] : memref<4x8x128xf32, #tpu.memory_space<vmem>>, vector<1x8x128xf32>
    %44 = vector.shape_cast %43 : vector<1x8x128xf32> to vector<8x128xf32>
    %45 = vector.shape_cast %42 : vector<8x128xf32> to vector<1x8x128xf32>
    tpu.vector_store %arg5[%c0_39, %c0_40, %c0_41], %45 {strides = array<i32>} : memref<4x8x128xf32, #tpu.memory_space<vmem>>, vector<1x8x128xf32>,
    %46 = vector.extract_strided_slice %39 {offsets = [8, 0], sizes = [8, 128], strides = [1, 1]} : vector<32x128xf32> to vector<8x128xf32>
    %47 = arith.addf %46, %40 : vector<8x128xf32>
    %c1_42 = arith.constant 1 : index
    %c0_43 = arith.constant 0 : index
    %c0_44 = arith.constant 0 : index
    %48 = vector.load %arg5[%c1_42, %c0_43, %c0_44] : memref<4x8x128xf32, #tpu.memory_space<vmem>>, vector<1x8x128xf32>
    %49 = vector.shape_cast %48 : vector<1x8x128xf32> to vector<8x128xf32>
    %50 = vector.shape_cast %47 : vector<8x128xf32> to vector<1x8x128xf32>
    tpu.vector_store %arg5[%c1_42, %c0_43, %c0_44], %50 {strides = array<i32>} : memref<4x8x128xf32, #tpu.memory_space<vmem>>, vector<1x8x128xf32>,
    %51 = vector.extract_strided_slice %39 {offsets = [16, 0], sizes = [8, 128], strides = [1, 1]} : vector<32x128xf32> to vector<8x128xf32>
    %52 = arith.addf %51, %40 : vector<8x128xf32>
    %c2_45 = arith.constant 2 : index
    %c0_46 = arith.constant 0 : index
    %c0_47 = arith.constant 0 : index
    %53 = vector.load %arg5[%c2_45, %c0_46, %c0_47] : memref<4x8x128xf32, #tpu.memory_space<vmem>>, vector<1x8x128xf32>
    %54 = vector.shape_cast %53 : vector<1x8x128xf32> to vector<8x128xf32>
    %55 = vector.shape_cast %52 : vector<8x128xf32> to vector<1x8x128xf32>
    tpu.vector_store %arg5[%c2_45, %c0_46, %c0_47], %55 {strides = array<i32>} : memref<4x8x128xf32, #tpu.memory_space<vmem>>, vector<1x8x128xf32>,
    %56 = vector.extract_strided_slice %39 {offsets = [24, 0], sizes = [8, 128], strides = [1, 1]} : vector<32x128xf32> to vector<8x128xf32>
    %57 = arith.addf %56, %40 : vector<8x128xf32>
    %c3_48 = arith.constant 3 : index
    %c0_49 = arith.constant 0 : index
    %c0_50 = arith.constant 0 : index
    %58 = vector.load %arg5[%c3_48, %c0_49, %c0_50] : memref<4x8x128xf32, #tpu.memory_space<vmem>>, vector<1x8x128xf32>
    %59 = vector.shape_cast %58 : vector<1x8x128xf32> to vector<8x128xf32>
    %60 = vector.shape_cast %57 : vector<8x128xf32> to vector<1x8x128xf32>
    tpu.vector_store %arg5[%c3_48, %c0_49, %c0_50], %60 {strides = array<i32>} : memref<4x8x128xf32, #tpu.memory_space<vmem>>, vector<1x8x128xf32>,
    return
  }
  func.func @transform_0(%arg0: i32) -> (i32, i32, i32) {
    %c0_i32 = arith.constant 0 : i32
    %c0_i32_0 = arith.constant 0 : i32
    %c0_i32_1 = arith.constant 0 : i32
    return %arg0, %c0_i32, %c0_i32_0 : i32, i32, i32
  }
  func.func @transform_1(%arg0: i32) -> (i32, i32) {
    %c0_i32 = arith.constant 0 : i32
    %c0_i32_0 = arith.constant 0 : i32
    %c0_i32_1 = arith.constant 0 : i32
    return %c0_i32, %c0_i32_0 : i32, i32
  }
  func.func @transform_2(%arg0: i32) -> (i32, i32) {
    %c0_i32 = arith.constant 0 : i32
    %c0_i32_0 = arith.constant 0 : i32
    %c0_i32_1 = arith.constant 0 : i32
    return %c0_i32, %c0_i32_0 : i32, i32
  }
  func.func @transform_3(%arg0: i32) -> (i32, i32) {
    %c0_i32 = arith.constant 0 : i32
    %c0_i32_0 = arith.constant 0 : i32
    %c0_i32_1 = arith.constant 0 : i32
    return %c0_i32, %c0_i32_0 : i32, i32
  }
  func.func @transform_4(%arg0: i32) -> (i32, i32, i32) {
    %c0_i32 = arith.constant 0 : i32
    %c0_i32_0 = arith.constant 0 : i32
    %c0_i32_1 = arith.constant 0 : i32
    return %arg0, %c0_i32, %c0_i32_0 : i32, i32, i32
  }
}

</mosaic_0001>

<bundles_post_ra>
// kernel: tpu_custom_call.1
= control target key start
LH: loop header
LB: loop body
LE: loop exit
PB: predicated region body
PF: predicated region fallthrough
CT: control target
= control target key end

     0   :  { %9 = vsyncpa [#allocation4], 0  ;;  %s1714_s0 = inlined_call_operand.hbm [shape: f32[8,4,128], index: 0, kind: input, shape index: {}]   ;;  %s1715_s1 = inlined_call_operand.vmem [shape: f32[24,4], index: 1, kind: input, shape index: {}]   ;;  %s1716_s2 = inlined_call_operand.hbm [shape: f32[384,128], index: 2, kind: input, shape index: {}]   ;;  %s1717_s3 = inlined_call_operand.vmem [shape: f32[8,128], index: 3, kind: input, shape index: {}]   ;;  %s1718_s4 = inlined_call_operand.hbm [shape: f32[8,8,128], index: 4, kind: output, shape index: {}]  }
   0x1   :  { %11 = vsyncpa [#allocation4 + $0x1], 0 }
   0x2   :  { %12 = vsyncpa [#allocation7], 0 }
   0x3   :  { %13 = vsyncpa [#allocation5], 0 }
   0x4   :  { %15 = vsyncpa [#allocation5 + $0x1], 0  ;;  %s1436_s15 = smov 0   ;;  %s1438_s16 = smov 0  }
   0x5   :  { %s1440_s17 = smov 0   ;;  %s1442_s18 = smov 0  }
   0x6 LB: > { %s1457_s19 = sadd.s32 4294967295, %s1398_s18   ;;  %s937_s20 = sadd.s32 4294967294, %s1398_s18   ;;  %s1398_s18 = sphi %s1442_s18, %s1738_s18   ;;  %s1394_s17 = sphi %s1440_s17, %s1737_s17   ;;  %s1390_s16 = sphi %s1438_s16, %s1736_s16   ;;  %s1386_s15 = sphi %s1436_s15, %s1735_s15  }
   0x7   : > { %p41_p0 = scmp.ne.s32.totalorder %s1390_s16, %s1386_s15  ;;  %p1719_p1 = scmp.eq.s32.totalorder %s1457_s19, 0 }
   0x8   : > { %p134_p3 = scmp.eq.s32.totalorder %s937_s20, 1  ;;  %p938_p5 = scmp.ge.s32.totalorder %s1398_s18, 1 }
   0x9   : > { %p1466_p4 = por %p1719_p1, %p41_p0  ;;  %p141_p7 = scmp.lt.s32.totalorder %s1398_s18, 3 }
   0xa   : > { %p1471_p6 = por %p134_p3, %p41_p0  ;;  %s1400_s24 = smov [#allocation6]  }
   0xb   : > { %s1722_s21 = scalar_select %p1466_p4, 1, 0 }
   0xc   : > { %s1723_s22 = scalar_select %p1471_p6, 1, 0 }
   0xd   : > { %p1476_p8 = pnand %p938_p5, %p141_p7  ;;  %s156_s25 = sshll.u32 %s1400_s24, 4  ;;  %s1480_s25 = int_to_ptr.vmem [resolvable:$true] %s156_s25 }
   0xe   : > { %s1492_s27 = sadd.s32 1, %s1398_s18   ;;  %s28_s28 = sadd.s32 1, %s1394_s17 }
   0xf   : > { %s1724_s23 = scalar_select %p1476_p8, 1, 0 }
  0x10   : > { %p1213_p9 = pneg %p1476_p8  ;;  %s25_s29 = ssub.s32 %s1398_s18, %s1492_s27 }
  0x11   : > { %s1270_s6 = scalar_lea.hbm %s1716_s2, 6144 }
  0x12   : > { %p1487_p11 = pnand %p1213_p9, %p1719_p1  ;;  %p1271_p12 = scmp.ne.s32.totalorder %s1716_s2, %s1270_s6 }
  0x13   : > { %p1277_p5 = scmp.lt.u32.totalorder %s1270_s6, %s1716_s2 }
  0x14   : > { %p1272_p13 = pneg %p1487_p11 }
  0x16   : > { %p1273_p0 = pnand %p1272_p13, %p1271_p12 }
  0x18   : > { %p1274_p3 = pneg %p1273_p0 }
  0x1a   : > { %p1279_p7 = pnand %p1277_p5, %p1274_p3 }
  0x1c   : > { %1282 = shalt.err (!%p1279_p7)
}
  0x1d   : > { %s1283_s11 = scalar_lea.vmem %s1480_s25, 6144  ;;  %p1291_p2 = scmp.lt.s32.totalorder %s1480_s25, %s1480_s25 }
  0x1e   : > { %p1284_p9 = scmp.ne.s32.totalorder %s1480_s25, %s1283_s11  ;;  %p1292_p6 = scmp.lt.s32.totalorder %s1283_s11, %s1283_s11 }
  0x20   : > { %p1286_p10 = pnand %p1284_p9, %p1272_p13  ;;  %p1293_p4 = por %p1292_p6, %p1291_p2 }
  0x22   : > { %p1287_p1 = pneg %p1286_p10 }
  0x24   : > { %p1294_p8 = pnand %p1293_p4, %p1287_p1 }
  0x26   : > { %1297 = shalt.err (!%p1294_p8)
}
  0x27   : > { %s1401_s12 = smov 128   ;;  %s1402_s13 = smov 8  }
  0x28   : > { %1216 = dma.hbm_to_vmem [thread:$0]  (!%p1487_p11), %s1716_s2, 6144, %s1480_s25, [#allocation7], %s1401_s12, %s1401_s12, %s1402_s13  }
  0x29   : > { %p26_p2 = scmp.eq.s32.totalorder %s25_s29, 0  ;;  %p35_p1 = scmp.ne.s32.totalorder %s1394_s17, %s1390_s16 }
  0x2a   : > { %p36_p4 = scmp.eq.s32.totalorder %s1398_s18, 0  ;;  %p1226_p6 = scmp.lt.s32.totalorder %s1398_s18, 2 }
  0x2b   : > { %s1523_s24 = scalar_select %p26_p2, %s1394_s17, %s28_s28  }
  0x2c   : > { %p37_p8 = por %p36_p4, %p35_p1  ;;  %p1726_p10 = scmp.eq.s32.totalorder %s1457_s19, 1 }
  0x2d   : > { %s173_s5 = sand.u32 1, %s1394_s17   ;;  %s975_s6 = sshll.u32 %s1398_s18, 8 }
  0x2e   : > { %p1527_p12 = por %p1726_p10, %p35_p1  ;;  %s941_s7 = sshll.u32 %s173_s5, 4 }
  0x2f   : > { %s1536_s9 = scalar_lea.hbm %s1714_s0, %s975_s6  ;;  %s177_s25 = scalar_lea.vmem [#allocation3], %s941_s7 }
  0x30   : > { %s184_s28 = sshll.u32 %s177_s25, 4  ;;  %p1538_p11 = pnand %p1226_p6, %p37_p8  ;;  %s1542_s28 = int_to_ptr.vmem [resolvable:$true] %s184_s28 }
  0x31   : > { %s1544_s10 = scalar_lea.sflag [#allocation4], %s173_s5  ;;  %s1298_s11 = scalar_lea.hbm %s1536_s9, 256 }
  0x32   : > { %p1299_p13 = scmp.ne.s32.totalorder %s1536_s9, %s1298_s11  ;;  %p1300_p0 = pneg %p1538_p11 }
  0x33   : > { %s1303_s14 = scalar_lea.hbm %s1714_s0, 512  ;;  %p1304_p7 = scmp.lt.u32.totalorder %s1536_s9, %s1714_s0 }
  0x34   : > { %p1301_p3 = pnand %p1300_p0, %p1299_p13  ;;  %p1305_p9 = scmp.lt.u32.totalorder %s1303_s14, %s1298_s11 }
  0x35   : > { %p1307_p1 = scmp.lt.u32.totalorder %s1298_s11, %s1536_s9 }
  0x36   : > { %p1302_p5 = pneg %p1301_p3  ;;  %p1306_p2 = por %p1305_p9, %p1304_p7 }
  0x38   : > { %p1308_p4 = por %p1307_p1, %p1306_p2 }
  0x3a   : > { %p1309_p6 = pnand %p1308_p4, %p1302_p5 }
  0x3c   : > { %1312 = shalt.err (!%p1309_p6)
}
  0x3d   : > { %s1313_s5 = scalar_lea.vmem %s1542_s28, 256  ;;  %s1403_s7 = smov [#allocation3]  }
  0x3e   : > { %p1314_p8 = scmp.ne.s32.totalorder %s1542_s28, %s1313_s5  ;;  %s1318_s26 = sshll.u32 %s1403_s7, 4  ;;  %s1319_s26 = int_to_ptr.vmem [resolvable:$false] %s1318_s26 }
  0x3f   : > { %s1320_s8 = scalar_lea.vmem %s1319_s26, 512  ;;  %p1321_p3 = scmp.lt.s32.totalorder %s1542_s28, %s1319_s26 }
  0x40   : > { %p1316_p10 = pnand %p1314_p8, %p1300_p0  ;;  %p1322_p7 = scmp.lt.s32.totalorder %s1320_s8, %s1313_s5 }
  0x42   : > { %p1317_p13 = pneg %p1316_p10  ;;  %p1323_p9 = por %p1322_p7, %p1321_p3 }
  0x44   : > { %p1324_p2 = pnand %p1323_p9, %p1317_p13 }
  0x46   : > { %1327 = shalt.err (!%p1324_p2)
}
  0x47   : > { %s1404_s25 = smov 64   ;;  %s1405_s11 = smov 4  }
  0x48   : > { %1220 = dma.hbm_to_vmem [thread:$0]  (!%p1538_p11), %s1536_s9, 256, %s1542_s28, %s1544_s10, %s1404_s25, %s1404_s25, %s1405_s11  }
  0x49   : > { %p1729_p0 = scmp.ne.s32.totalorder %s1724_s23, 0 }
  0x4a   : > { %s1575_s12 = sand.u32 (!%p1729_p0), 1, %s1390_s16   ;;  %p1730_p5 = scmp.ne.s32.totalorder (!%p1729_p0), %s1722_s21, 0 }
  0x4b   : > { %196 = sbr.rel (%p1729_p0) target bundleno = 558 (0x22e), region = 36  ;;  %s945_s13 = sshll.u32 (!%p1729_p0), %s1575_s12, 4 }
  0x4c   : > { %s199_s14 = scalar_lea.sflag (!%p1729_p0), [#allocation4], %s1575_s12  ;;  %s202_s20 = scalar_lea.vmem (!%p1729_p0), [#allocation3], %s945_s13 }
  0x52   : > { %1373 = dma.done.wait (%p1730_p5), %s199_s14, 256  }
  0x53   : > { %1375 = vsyncadd (%p1730_p5), %s199_s14, 4294967040  ;;  %p1731_p1 = scmp.eq.s32.totalorder %s1457_s19, 0 }
  0x55   : > { %1377 = dma.done.wait (%p1731_p1), [#allocation7], 6144   ;;  %p1732_p11 = pmov %p1731_p1 }
  0x56   : > { %v1406_v0 = vmov 0.0   ;;  %vm1407_vm0 = vmmov 0   ;;  %vm247_vm1 = vcmask 1043456   ;;  %vm237_vm2 = vcmask 31744   ;;  %v236_v1 = vld [vmem:[%s202_s20] sm:$0xf] }
  0x57   : > { %1379 = vsyncadd (%p1732_p11), [#allocation7], 4294961152  ;;  %1057 = vmatprep.subr.mxu0 %v1406_v0  ;;  %1203 = vmatprep.subr.mxu1 %v1406_v0  ;;  %v1596_v2 = vld [vmem:[%s1715_s1] sm:$0xff]  ;;  %v1601_v3 = vld [vmem:[%s1715_s1 + $0x10] sm:$0xff]  ;;  %s947_s6 = sshll.u32 %s1575_s12, 5  ;;  %s976_s25 = sshll.u32 %s1457_s19, 9 }
  0x58   : > { %1059 = vmatprep.mubr.msk.f32.mxu0 %vm1407_vm0, %v1406_v0  ;;  %1065 = vmatprep.mubr.msk.f32.mxu1 %vm1407_vm0, %v1406_v0  ;;  %v952_v4 = vld [vmem:[%s202_s20 + $0x4] sm:$0xf]  ;;  %v627_v6 = vld [vmem:[#allocation6 + $0x88] sm:$0xff]  ;;  %v629_v16 = vld [vmem:[#allocation6 + $0x98] sm:$0xff]  ;;  %s230_s26 = scalar_lea.vmem [#allocation8], %s947_s6  ;;  %s1670_s14 = scalar_lea.hbm %s1718_s4, %s976_s25 }
  0x59   : > { %1058 = vmatpush3.msk.msra.mxu0 %vm247_vm1, %v236_v1  ;;  %1204 = vmatpush3.msk.msra.mxu1 %vm247_vm1, %v236_v1  ;;  %v626_v5 = vld [vmem:[#allocation6 + $0x80] sm:$0xff]  ;;  %v1615_v7 = vld [vmem:[%s1715_s1 + $0x8] sm:$0xff]  ;;  %v628_v15 = vld [vmem:[#allocation6 + $0x90] sm:$0xff]  ;;  %s854_s8 = sshll.u32 %s230_s26, 4  ;;  %s1408_s19 = smov [#allocation8]   ;;  %s1665_s8 = int_to_ptr.vmem [resolvable:$true] %s854_s8 }
  0x5a   : > { %1060 = vmatmul.mubr.msk.f32.vlgmr.msra.gmra.mrb[0].mxu0 %vm237_vm2, %v1596_v2  ;;  %1066 = vmatmul.mubr.msk.f32.vlgmr.msra.gmra.mrb[0].mxu1 %vm237_vm2, %v1601_v3  ;;  %v962_v8 = vld [vmem:[%s202_s20 + $0xc] sm:$0xf]  ;;  %v957_v9 = vld [vmem:[%s202_s20 + $0x8] sm:$0xf]  ;;  %v610_v10 = vld [vmem:[#allocation6] sm:$0xff]  ;;  %v1139_v11 = vpack.c.bf16 %v627_v6, %v626_v5  ;;  %v1143_v19 = vpack.c.bf16 %v629_v16, %v628_v15  ;;  %s841_s20 = scalar_lea.sflag [#allocation5], %s1575_s12 }
  0x5b   : > { %1068 = vmatprep.subr.mxu1 %v1406_v0  ;;  %1062 = vmatprep.mubr.msk.f32.mxu0 %vm1407_vm0, %v1406_v0  ;;  %v611_v12 = vld [vmem:[#allocation6 + $0x8] sm:$0xff]  ;;  %v642_v13 = vld [vmem:[#allocation6 + $0x100] sm:$0xff]  ;;  %v612_v20 = vld [vmem:[#allocation6 + $0x10] sm:$0xff]  ;;  %s1328_s21 = scalar_lea.vmem %s1665_s8, 512  ;;  %s1332_s23 = sshll.u32 %s1408_s19, 4  ;;  %s1333_s23 = int_to_ptr.vmem [resolvable:$false] %s1332_s23 }
  0x5c   : > { %1069 = vmatpush3.msk.msra.mxu1 %vm247_vm1, %v952_v4  ;;  %1070 = vmatprep.mubr.msk.f32.mxu1 %vm1407_vm0, %v1406_v0  ;;  %v643_v14 = vld [vmem:[#allocation6 + $0x108] sm:$0xff]  ;;  %v1141_v18 = vpack.c.bf16 %v611_v12, %v610_v10  ;;  %v613_v21 = vld [vmem:[#allocation6 + $0x18] sm:$0xff]  ;;  %v630_v22 = vld [vmem:[#allocation6 + $0xa0] sm:$0xff]  ;;  %p1329_p4 = scmp.ne.s32.totalorder %s1665_s8, %s1328_s21  ;;  %s1334_s9 = scalar_lea.vmem %s1333_s23, 1024 }
  0x5d   : > { %1090 = vmatprep.subr.mxu1 %v1406_v0  ;;  %1079 = vmatprep.subr.mxu0 %v1406_v0  ;;  %v1171_v17 = vpack.c.bf16 %v643_v14, %v642_v13  ;;  %v631_v23 = vld [vmem:[#allocation6 + $0xa8] sm:$0xff]  ;;  %v1145_v24 = vpack.c.bf16 %v613_v21, %v612_v20  ;;  %v614_v25 = vld [vmem:[#allocation6 + $0x20] sm:$0xff]  ;;  %v644_v28 = vld [vmem:[#allocation6 + $0x110] sm:$0xff]  ;;  %p1335_p10 = scmp.lt.s32.totalorder %s1665_s8, %s1333_s23  ;;  %p1336_p13 = scmp.lt.s32.totalorder %s1334_s9, %s1328_s21 }
  0x5e   : > { %1063 = vmatmul.mubr.msk.f32.gmra.mrb[2].mxu0 %vm237_vm2, %v1615_v7  ;;  %1071 = vmatmul.mubr.msk.f32.vlgmr.msra.gmra.mrb[2].mxu1 %vm237_vm2, %v1596_v2  ;;  %v1147_v26 = vpack.c.bf16 %v631_v23, %v630_v22  ;;  %v615_v27 = vld [vmem:[#allocation6 + $0x28] sm:$0xff]  ;;  %v645_v29 = vld [vmem:[#allocation6 + $0x118] sm:$0xff]  ;;  %v632_v30 = vld [vmem:[#allocation6 + $0xb0] sm:$0xff]  ;;  %p1330_p6 = pnand %p1329_p4, %p1527_p12 }
  0x5f   : > { %1091 = vmatpush3.msk.msra.mxu1 %vm247_vm1, %v962_v8  ;;  %1080 = vmatpush3.msk.msra.mxu0 %vm247_vm1, %v957_v9  ;;  %v633_v31 = vld [vmem:[#allocation6 + $0xb8] sm:$0xff]  ;;  %v1149_v32 = vpack.c.bf16 %v615_v27, %v614_v25  ;;  %v1175_v33 = vpack.c.bf16 %v645_v29, %v644_v28  ;;  %v616_v34 = vld [vmem:[#allocation6 + $0x30] sm:$0xff]  ;;  %v646_v37 = vld [vmem:[#allocation6 + $0x120] sm:$0xff]  ;;  %p1337_p3 = por %p1336_p13, %p1335_p10 }
  0x60   : > { %1073 = vmatprep.mubr.msk.f32.mxu1 %vm1407_vm0, %v1406_v0  ;;  %1081 = vmatprep.mubr.msk.f32.mxu0 %vm1407_vm0, %v1406_v0  ;;  %v1151_v35 = vpack.c.bf16 %v633_v31, %v632_v30  ;;  %v617_v36 = vld [vmem:[#allocation6 + $0x38] sm:$0xff]  ;;  %v647_v38 = vld [vmem:[#allocation6 + $0x128] sm:$0xff]  ;;  %v634_v39 = vld [vmem:[#allocation6 + $0xc0] sm:$0xff]  ;;  %p1331_p8 = pneg %p1330_p6 }
  0x61   : > { %1140 = vmatprep.subr.bf16.mxu0 %v1139_v11  ;;  %1172 = vmatprep.subr.bf16.mxu1 %v1171_v17  ;;  %v635_v40 = vld [vmem:[#allocation6 + $0xc8] sm:$0xff]  ;;  %v1153_v41 = vpack.c.bf16 %v617_v36, %v616_v34  ;;  %v1179_v42 = vpack.c.bf16 %v647_v38, %v646_v37  ;;  %v618_v43 = vld [vmem:[#allocation6 + $0x40] sm:$0xff]  ;;  %v648_v46 = vld [vmem:[#allocation6 + $0x130] sm:$0xff] }
  0x62   : > { %1074 = vmatmul.mubr.msk.f32.gmra.mrb[4].mxu1 %vm237_vm2, %v1615_v7  ;;  %1082 = vmatmul.mubr.msk.f32.vlgmr.msra.gmra.mrb[4].mxu0 %vm237_vm2, %v1596_v2  ;;  %v1155_v44 = vpack.c.bf16 %v635_v40, %v634_v39  ;;  %v619_v45 = vld [vmem:[#allocation6 + $0x48] sm:$0xff]  ;;  %v649_v47 = vld [vmem:[#allocation6 + $0x138] sm:$0xff]  ;;  %v636_v48 = vld [vmem:[#allocation6 + $0xd0] sm:$0xff]  ;;  %p1338_p7 = pnand %p1337_p3, %p1331_p8 }
  0x63   : > { %1076 = vmatprep.mubr.msk.f32.mxu1 %vm1407_vm0, %v1406_v0  ;;  %1084 = vmatprep.mubr.msk.f32.mxu0 %vm1407_vm0, %v1406_v0  ;;  %v637_v49 = vld [vmem:[#allocation6 + $0xd8] sm:$0xff]  ;;  %v1157_v50 = vpack.c.bf16 %v619_v45, %v618_v43  ;;  %v1183_v51 = vpack.c.bf16 %v649_v47, %v648_v46  ;;  %v620_v52 = vld [vmem:[#allocation6 + $0x50] sm:$0xff]  ;;  %v650_v55 = vld [vmem:[#allocation6 + $0x140] sm:$0xff] }
  0x64   : > { %1142 = vmatpush3.bf16.msra.mxu0 %v1141_v18  ;;  %v1159_v53 = vpack.c.bf16 %v637_v49, %v636_v48  ;;  %v621_v54 = vld [vmem:[#allocation6 + $0x58] sm:$0xff]  ;;  %v651_v56 = vld [vmem:[#allocation6 + $0x148] sm:$0xff]  ;;  %v638_v57 = vld [vmem:[#allocation6 + $0xe0] sm:$0xff] }
  0x65   : > { %1144 = vmatprep.subr.bf16.mxu0 %v1143_v19  ;;  %v639_v58 = vld [vmem:[#allocation6 + $0xe8] sm:$0xff]  ;;  %v1161_v59 = vpack.c.bf16 %v621_v54, %v620_v52  ;;  %v1187_v60 = vpack.c.bf16 %v651_v56, %v650_v55  ;;  %v622_v62 = vld [vmem:[#allocation6 + $0x60] sm:$0xff]  ;;  %v652_v1 = vld [vmem:[#allocation6 + $0x150] sm:$0xff] }
  0x66   : > { %1077 = vmatmul.mubr.msk.f32.gmra.mrb[6].mxu1 %vm237_vm2, %v1601_v3  ;;  %1085 = vmatmul.mubr.msk.f32.gmra.mrb[6].mxu0 %vm237_vm2, %v1615_v7  ;;  %v1163_v61 = vpack.c.bf16 %v639_v58, %v638_v57  ;;  %v623_v63 = vld [vmem:[#allocation6 + $0x68] sm:$0xff]  ;;  %v640_v4 = vld [vmem:[#allocation6 + $0xf0] sm:$0xff]  ;;  %v641_v5 = vld [vmem:[#allocation6 + $0xf8] sm:$0xff] }
  0x67   : > { %1092 = vmatprep.mubr.msk.f32.mxu1 %vm1407_vm0, %v1406_v0  ;;  %1087 = vmatprep.mubr.msk.f32.mxu0 %vm1407_vm0, %v1406_v0  ;;  %v1167_v6 = vpack.c.bf16 %v641_v5, %v640_v4  ;;  %v625_v8 = vld [vmem:[#allocation6 + $0x78] sm:$0xff]  ;;  %v654_v10 = vld [vmem:[#allocation6 + $0x160] sm:$0xff]  ;;  %v655_v11 = vld [vmem:[#allocation6 + $0x168] sm:$0xff] }
  0x68   : > { %1146 = vmatpush3.bf16.msra.mxu0 %v1145_v24  ;;  %v1195_v12 = vpack.c.bf16 %v655_v11, %v654_v10  ;;  %v656_v13 = vld [vmem:[#allocation6 + $0x170] sm:$0xff]  ;;  %v657_v14 = vld [vmem:[#allocation6 + $0x178] sm:$0xff]  ;;  %v828_v47 = vld [vmem:[%s1717_s3] sm:$0xff] }
  0x69   : > { %1148 = vmatprep.subr.bf16.mxu0 %v1147_v26  ;;  %v1199_v15 = vpack.c.bf16 %v657_v14, %v656_v13 }
  0x6a   : > { %1093 = vmatmul.mubr.msk.f32.vlgmr.msra.gmra.mrb[8].mxu1 %vm237_vm2, %v1596_v2  ;;  %1088 = vmatmul.mubr.msk.f32.gmra.mrb[8].mxu0 %vm237_vm2, %v1601_v3  ;;  %v653_v2 = vld [vmem:[#allocation6 + $0x158] sm:$0xff] }
  0x6b   : > { %1095 = vmatprep.mubr.msk.f32.mxu1 %vm1407_vm0, %v1406_v0  ;;  %1174 = vmatpush3.bf16.msra.mxu1 %v1171_v17 }
  0x6c   : > { %1150 = vmatpush3.bf16.msra.mxu0 %v1149_v32  ;;  %1176 = vmatprep.subr.bf16.mxu1 %v1175_v33 }
  0x6d   : > { %1152 = vmatprep.subr.bf16.mxu0 %v1151_v35 }
  0x6e   : > { %1096 = vmatmul.mubr.msk.f32.gmra.mrb[10].mxu1 %vm237_vm2, %v1615_v7  ;;  %v624_v7 = vld [vmem:[#allocation6 + $0x70] sm:$0xff] }
  0x6f   : > { %1098 = vmatprep.mubr.msk.f32.mxu1 %vm1407_vm0, %v1406_v0  ;;  %1178 = vmatpush3.bf16.msra.mxu1 %v1175_v33  ;;  %v1165_v0 = vpack.c.bf16 %v623_v63, %v622_v62  ;;  %v1169_v9 = vpack.c.bf16 %v625_v8, %v624_v7 }
  0x70   : > { %1154 = vmatpush3.bf16.msra.mxu0 %v1153_v41  ;;  %1180 = vmatprep.subr.bf16.mxu1 %v1179_v42 }
  0x71   : > { %1156 = vmatprep.subr.bf16.mxu0 %v1155_v44 }
  0x72   : > { %1099 = vmatmul.mubr.msk.f32.gmra.mrb[12].mxu1 %vm237_vm2, %v1601_v3  ;;  %v1191_v3 = vpack.c.bf16 %v653_v2, %v652_v1 }
  0x73   : > { %1182 = vmatpush3.bf16.msra.mxu1 %v1179_v42 }
  0x74   : > { %1158 = vmatpush3.bf16.msra.mxu0 %v1157_v50  ;;  %1184 = vmatprep.subr.bf16.mxu1 %v1183_v51 }
  0x75   : > { %1160 = vmatprep.subr.bf16.mxu0 %v1159_v53 }
  0x77   : > { %1186 = vmatpush3.bf16.msra.mxu1 %v1183_v51 }
  0x78   : > { %1162 = vmatpush3.bf16.msra.mxu0 %v1161_v59  ;;  %1188 = vmatprep.subr.bf16.mxu1 %v1187_v60 }
  0x79   : > { %1164 = vmatprep.subr.bf16.mxu0 %v1163_v61 }
  0x7b   : > { %1190 = vmatpush3.bf16.msra.mxu1 %v1187_v60 }
  0x7c   : > { %1166 = vmatpush3.bf16.msra.mxu0 %v1165_v0  ;;  %1192 = vmatprep.subr.bf16.mxu1 %v1191_v3 }
  0x7d   : > { %1168 = vmatprep.subr.bf16.mxu0 %v1167_v6 }
  0x7f   : > { %1194 = vmatpush3.bf16.msra.mxu1 %v1191_v3 }
  0x80   : > { %1170 = vmatpush3.bf16.msra.mxu0 %v1169_v9  ;;  %1196 = vmatprep.subr.bf16.mxu1 %v1195_v12 }
  0x83   : > { %1198 = vmatpush3.bf16.msra.mxu1 %v1195_v12 }
  0x84   : > { %1200 = vmatprep.subr.bf16.mxu1 %v1199_v15 }
  0x87   : > { %1202 = vmatpush3.bf16.msra.mxu1 %v1199_v15 }
 0x12d   : > { %v327_v16 = vpop.f32.mrb[0].mxu1  ;;  %v317_v17 = vpop.f32.mrb[0].mxu0 }
 0x12e   : > { %v1067_v18 = vpop.f32.mrb[1].mxu1  ;;  %1133 = vmatprep.mubr.f32.mxu1 %v327_v16  ;;  %v1061_v19 = vpop.f32.mrb[1].mxu0 }
 0x131   : > { %v322_v20 = vpop.f32.mrb[2].mxu0  ;;  %v405_v21 = vpop.f32.mrb[2].mxu1 }
 0x132   : > { %v1072_v22 = vpop.f32.mrb[3].mxu1  ;;  %722 = vmatprep.mubr.f32.mxu0 %v322_v20  ;;  %v1064_v23 = vpop.f32.mrb[3].mxu0 }
 0x133   : > { %723 = vmatmul.mubr.f32.vlgmr.msra.gmra.mrb[10].mxu0 %v317_v17 }
 0x135   : > { %v410_v24 = vpop.f32.mrb[4].mxu1  ;;  %v493_v25 = vpop.f32.mrb[4].mxu0 }
 0x136   : > { %v1075_v26 = vpop.f32.mrb[5].mxu1  ;;  %727 = vmatprep.mubr.f32.mxu0 %v410_v24  ;;  %v1083_v27 = vpop.f32.mrb[5].mxu0 }
 0x137   : > { %728 = vmatmul.mubr.f32.gmra.mrb[12].mxu0 %v405_v21 }
 0x139   : > { %v415_v28 = vpop.f32.mrb[6].mxu1  ;;  %v498_v29 = vpop.f32.mrb[6].mxu0 }
 0x13a   : > { %v1078_v30 = vpop.f32.mrb[7].mxu1  ;;  %732 = vmatprep.mubr.f32.mxu0 %v498_v29  ;;  %1134 = vmatmul.mubr.f32.vlgmr.msra.gmra.mrb[14].mxu1 %v415_v28  ;;  %v1086_v31 = vpop.f32.mrb[7].mxu0 }
 0x13b   : > { %733 = vmatmul.mubr.f32.gmra.mrb[14].mxu0 %v493_v25 }
 0x13d   : > { %v581_v32 = vpop.f32.mrb[8].mxu1  ;;  %v503_v33 = vpop.f32.mrb[8].mxu0 }
 0x13e   : > { %v1094_v34 = vpop.f32.mrb[9].mxu1  ;;  %v1089_v35 = vpop.f32.mrb[9].mxu0  ;;  %1136 = vmatprep.mubr.f32.mxu1 %v503_v33 }
 0x141   : > { %v586_v36 = vpop.f32.mrb[10].mxu1 }
 0x142   : > { %v1097_v37 = vpop.f32.mrb[11].mxu1  ;;  %737 = vmatprep.mubr.f32.mxu0 %v586_v36 }
 0x143   : > { %738 = vmatmul.mubr.f32.gmra.mrb[16].mxu0 %v581_v32 }
 0x145   : > { %v591_v38 = vpop.f32.mrb[12].mxu1 }
 0x146   : > { %v1100_v39 = vpop.f32.mrb[13].mxu1  ;;  %1137 = vmatmul.mubr.f32.gmra.mrb[16].mxu1 %v591_v38 }
 0x206   : > { %v1025_v40 = vpop.f32.mrb[10].mxu0 }
 0x207   : > { %v1026_v41 = vpop.f32.mrb[11].mxu0 }
 0x208   : > { %v1027_v42 = vadd.f32 %v1026_v41, %v1025_v40 }
 0x20a   : > { %v1028_v43 = vpop.f32.mrb[12].mxu0 }
 0x20b   : > { %v1029_v44 = vpop.f32.mrb[13].mxu0 }
 0x20c   : > { %v1030_v45 = vadd.f32 %v1029_v44, %v1028_v43 }
 0x20d   : > { %v1135_v46 = vpop.f32.mrb[14].mxu1 }
 0x20e   : > { %v815_v48 = vadd.f32 %v1135_v46, %v1030_v45  ;;  %v1031_v49 = vpop.f32.mrb[14].mxu0  ;;  %v809_v50 = vpop.f32.mrb[15].mxu1 }
 0x20f   : > { %v810_v51 = vadd.f32 %v1027_v42, %v809_v50  ;;  %v1032_v52 = vpop.f32.mrb[15].mxu0 }
 0x210   : > { %v831_v53 = vadd.f32 %v828_v47, %v815_v48  ;;  %v1033_v54 = vadd.f32 %v1032_v52, %v1031_v49 }
 0x211   : > { %v829_v55 = vadd.f32 %v828_v47, %v810_v51 }
 0x212   : > { %967 = vst [vmem:[%s230_s26 + $0x8] sm:$0xff] %v831_v53 }
 0x213   : > { %830 = vst [vmem:[%s230_s26] sm:$0xff] %v829_v55 }
 0x216   : > { %v1034_v56 = vpop.f32.mrb[16].mxu0 }
 0x217   : > { %v1035_v57 = vpop.f32.mrb[17].mxu0 }
 0x218   : > { %v1036_v58 = vadd.f32 %v1035_v57, %v1034_v56 }
 0x219   : > { %v1138_v59 = vpop.f32.mrb[16].mxu1 }
 0x21a   : > { %v825_v60 = vadd.f32 %v1138_v59, %v1036_v58  ;;  %v819_v61 = vpop.f32.mrb[17].mxu1 }
 0x21b   : > { %v820_v62 = vadd.f32 %v1033_v54, %v819_v61 }
 0x21c   : > { %v837_v63 = vadd.f32 %v828_v47, %v825_v60 }
 0x21d   : > { %v834_v0 = vadd.f32 %v828_v47, %v820_v62 }
 0x21e   : > { %969 = vst [vmem:[%s230_s26 + $0x18] sm:$0xff] %v837_v63 }
 0x21f   : > { %968 = vst [vmem:[%s230_s26 + $0x10] sm:$0xff] %v834_v0 }
 0x220   : > { %1341 = shalt.err (!%p1338_p7)
}
 0x221   : > { %s1342_s28 = scalar_lea.hbm %s1670_s14, 512  ;;  %s1346_s6 = scalar_lea.hbm %s1718_s4, 1024 }
 0x222   : > { %p1343_p9 = scmp.ne.s32.totalorder %s1670_s14, %s1342_s28  ;;  %p1347_p5 = scmp.lt.u32.totalorder %s1670_s14, %s1718_s4 }
 0x223   : > { %p1348_p1 = scmp.lt.u32.totalorder %s1346_s6, %s1342_s28  ;;  %p1350_p4 = scmp.lt.u32.totalorder %s1342_s28, %s1670_s14 }
 0x224   : > { %p1344_p2 = pnand %p1343_p9, %p1527_p12 }
 0x225   : > { %p1349_p11 = por %p1348_p1, %p1347_p5 }
 0x226   : > { %p1345_p0 = pneg %p1344_p2 }
 0x227   : > { %p1351_p6 = por %p1350_p4, %p1349_p11 }
 0x229   : > { %p1352_p8 = pnand %p1351_p6, %p1345_p0 }
 0x22b   : > { %1355 = shalt.err (!%p1352_p8)
}
 0x22c   : > { %s1409_s26 = smov 128   ;;  %s1410_s25 = smov 8  }
 0x22d   : > { %1211 = dma.vmem_to_hbm [thread:$0]  (%p1527_p12), %s1665_s8, 512, %s1670_s14, %s841_s20, %s1409_s26, %s1409_s26, %s1410_s25  }
 0x22e PF: > { %s869_s11 = sand.u32 1, %s1386_s15   ;;  %p1733_p10 = scmp.ne.s32.totalorder %s1723_s22, 0 }
 0x22f   : > { %p1734_p13 = scmp.ge.s32.totalorder %s1398_s18, 2  ;;  %s870_s13 = scalar_lea.sflag [#allocation5], %s869_s11 }
 0x231   : > { %p1222_p3 = pnand %p1734_p13, %p1733_p10 }
 0x233   : > { %1381 = dma.done.wait (!%p1222_p3), %s870_s13, 512  }
 0x234   : > { %1383 = vsyncadd (!%p1222_p3), %s870_s13, 4294966784  ;;  %p18_p7 = scmp.ge.s32.totalorder %s1492_s27, 4   ;;  %s1735_s15 = smov %s1390_s16 }
 0x235   : > { %s1736_s16 = smov %s1394_s17  ;;  %s1737_s17 = smov %s1523_s24 }
 0x236   : > { %s1738_s18 = smov %s1492_s27  ;;  %20 = sbr.rel (!%p18_p7) target bundleno = 6 (0x6), region = 91 }
 0x23d   :  { %875 = vsyncpa [#allocation4], 1 }
 0x23e   :  { %877 = vsyncpa [#allocation4 + $0x1], 1 }
 0x23f   :  { %878 = vsyncpa [#allocation7], 1 }
 0x240   :  { %879 = vsyncpa [#allocation5], 1 }
 0x241   :  { %881 = vsyncpa [#allocation5 + $0x1], 1 }

</bundles_post_ra>
